<compile_context>
chip_gen: v6e
topology: v6e:2x2x1
jax: 0.10.0
libtpu: 0.0.40
codegen_flags: <defaults>
</compile_context>

<pallas_src>
import jax
import jax.numpy as jnp
from jax import lax
from jax.experimental import pallas as pl
from jax.experimental.pallas import tpu as pltpu


def _round_up(v, m):
    return ((v + m - 1) // m) * m


# ---------------------------------------------------------------------------
# Kernel 1: hoisted input projection  gates_x = x_flat @ W_ih^T + bias
# ---------------------------------------------------------------------------
def _input_proj_kernel(x_ref, wih_ref, b_ref, gx_ref):
    gx_ref[...] = (jnp.dot(x_ref[...], wih_ref[...],
                           preferred_element_type=jnp.float32)
                   + b_ref[...])


# ---------------------------------------------------------------------------
# Kernel 2: serial LSTM recurrence over T + fused SoftGBM epilogue
# ---------------------------------------------------------------------------
def _make_recurrence_kernel(H_pad, shrinkage):
    def kernel(gx_ref, whh_ref, wg_ref, bg_ref, phil_ref, phir_ref,
               out_ref, h_out_ref, c_out_ref, h_sc, c_sc):
        t = pl.program_id(0)

        @pl.when(t == 0)
        def _():
            # init_lstm_state=None -> zeros
            h_sc[...] = jnp.zeros_like(h_sc)
            c_sc[...] = jnp.zeros_like(c_sc)

        # (B_pad, 4*H_pad): precomputed input part + recurrent part only
        gates = gx_ref[0] + jnp.dot(h_sc[...], whh_ref[...],
                                    preferred_element_type=jnp.float32)
        # lane-aligned gate slices (H_pad is a multiple of 128)
        i_g = jax.nn.sigmoid(gates[:, 0 * H_pad:1 * H_pad])
        f_g = jax.nn.sigmoid(gates[:, 1 * H_pad:2 * H_pad])
        g_g = jnp.tanh(gates[:, 2 * H_pad:3 * H_pad])
        o_g = jax.nn.sigmoid(gates[:, 3 * H_pad:4 * H_pad])
        c_new = f_g * c_sc[...] + i_g * g_g
        h_new = o_g * jnp.tanh(c_new)
        c_sc[...] = c_new
        h_sc[...] = h_new

        @pl.when(t == pl.num_programs(0) - 1)
        def _():
            # hidden_pooling == "last": use final hidden state.
            # SoftGBM (depth-1 trees): p = sigmoid(h @ w + b),
            # tree pred = (1-p)*phi_left + p*phi_right; padded trees -> 0.
            logits = (jnp.dot(h_new, wg_ref[...],
                              preferred_element_type=jnp.float32)
                      + bg_ref[...])
            p = jax.nn.sigmoid(logits)
            tree_pred = (1.0 - p) * phil_ref[...] + p * phir_ref[...]
            out_ref[...] = shrinkage * jnp.sum(tree_pred, axis=-1,
                                               keepdims=True)
            h_out_ref[...] = h_new
            c_out_ref[...] = c_new

    return kernel


def lstsgbm_forward(x, params):
    """x: (B, T, I) float32. Returns (out (B,1), (h_T (1,B,H), c_T (1,B,H)))."""
    (wih_t, whh_t, bias, wg, bg, phil, phir, shrinkage) = params
    B, T, I = x.shape
    H = whh_t.shape[0]
    n_trees = wg.shape[1]

    B_pad = _round_up(B, 8)
    H_pad = _round_up(H, 128)
    NT_pad = _round_up(n_trees, 128)
    G = 4 * H_pad

    # ---- zero-pad params to lane/sublane-aligned shapes -------------------
    def pad_gate_cols(w):
        out = jnp.zeros((w.shape[0], G), jnp.float32)
        for k in range(4):
            out = out.at[:, k * H_pad:k * H_pad + H].set(
                w[:, k * H:(k + 1) * H])
        return out

    wih_p = pad_gate_cols(wih_t.astype(jnp.float32))                   # (I, G)
    whh_p = pad_gate_cols(
        jnp.zeros((H_pad, 4 * H), jnp.float32).at[:H].set(whh_t))      # (H_pad, G)
    bias_p = pad_gate_cols(bias.astype(jnp.float32))                   # (1, G)
    wg_p = jnp.zeros((H_pad, NT_pad), jnp.float32).at[:H, :n_trees].set(wg)
    bg_p = jnp.zeros((1, NT_pad), jnp.float32).at[:, :n_trees].set(bg)
    phil_p = jnp.zeros((1, NT_pad), jnp.float32).at[:, :n_trees].set(phil)
    phir_p = jnp.zeros((1, NT_pad), jnp.float32).at[:, :n_trees].set(phir)

    # ---- time-major, batch-padded input; flatten for one big matmul -------
    x_tm = jnp.transpose(x, (1, 0, 2))                                 # (T, B, I)
    x_tm = jnp.pad(x_tm, ((0, 0), (0, B_pad - B), (0, 0)))             # (T, B_pad, I)
    x_flat = x_tm.reshape(T * B_pad, I)

    # ---- Stage 1: hoisted input projection (one MXU-friendly matmul) ------
    # TODO(synk): tile the row dim (grid over T) if T*B_pad*G*4 bytes nears VMEM.
    gx_flat = pl.pallas_call(
        _input_proj_kernel,
        grid=(1,),
        in_specs=[
            pl.BlockSpec((T * B_pad, I), lambda i: (0, 0)),
            pl.BlockSpec((I, G), lambda i: (0, 0)),
            pl.BlockSpec((1, G), lambda i: (0, 0)),
        ],
        out_specs=pl.BlockSpec((T * B_pad, G), lambda i: (0, 0)),
        out_shape=jax.ShapeDtypeStruct((T * B_pad, G), jnp.float32),
        compiler_params=pltpu.CompilerParams(
            dimension_semantics=("arbitrary",),
            vmem_limit_bytes=32 * 1024 * 1024),
    )(x_flat, wih_p, bias_p)
    gx = gx_flat.reshape(T, B_pad, G)

    # ---- Stage 2: serial recurrence, gates streamed, weights resident -----
    kernel = _make_recurrence_kernel(H_pad, float(shrinkage))
    out, h_T, c_T = pl.pallas_call(
        kernel,
        grid=(T,),
        in_specs=[
            pl.BlockSpec((1, B_pad, G), lambda t: (t, 0, 0)),    # gates_x[t]
            pl.BlockSpec((H_pad, G), lambda t: (0, 0)),          # W_hh^T
            pl.BlockSpec((H_pad, NT_pad), lambda t: (0, 0)),     # GBM root weights
            pl.BlockSpec((1, NT_pad), lambda t: (0, 0)),         # GBM root biases
            pl.BlockSpec((1, NT_pad), lambda t: (0, 0)),         # left-leaf phis
            pl.BlockSpec((1, NT_pad), lambda t: (0, 0)),         # right-leaf phis
        ],
        out_specs=[
            pl.BlockSpec((B_pad, 1), lambda t: (0, 0)),
            pl.BlockSpec((B_pad, H_pad), lambda t: (0, 0)),
            pl.BlockSpec((B_pad, H_pad), lambda t: (0, 0)),
        ],
        out_shape=[
            jax.ShapeDtypeStruct((B_pad, 1), jnp.float32),
            jax.ShapeDtypeStruct((B_pad, H_pad), jnp.float32),
            jax.ShapeDtypeStruct((B_pad, H_pad), jnp.float32),
        ],
        scratch_shapes=[
            pltpu.VMEM((B_pad, H_pad), jnp.float32),   # h state
            pltpu.VMEM((B_pad, H_pad), jnp.float32),   # c state
        ],
        compiler_params=pltpu.CompilerParams(
            dimension_semantics=("arbitrary",),
            vmem_limit_bytes=32 * 1024 * 1024),
    )(gx, whh_p, wg_p, bg_p, phil_p, phir_p)

    out = out[:B]
    h_T = h_T[:B, :H][None]
    c_T = c_T[:B, :H][None]
    return out, (h_T, c_T)


def init_params(key, I, H, n_trees, forget_bias=1.0):
    """Deterministic synthetic init matching torch.nn.LSTM / SoftGBM shapes."""
    ks = jax.random.split(key, 8)
    s = 1.0 / jnp.sqrt(H)
    w_ih = jax.random.uniform(ks[0], (4 * H, I), jnp.float32, -s, s)
    w_hh = jax.random.uniform(ks[1], (4 * H, H), jnp.float32, -s, s)
    b_ih = jax.random.uniform(ks[2], (4 * H,), jnp.float32, -s, s)
    b_hh = jax.random.uniform(ks[3], (4 * H,), jnp.float32, -s, s)
    # _init_forget_bias fills bias[H:2H] of BOTH bias_ih and bias_hh
    b_ih = b_ih.at[H:2 * H].set(forget_bias)
    b_hh = b_hh.at[H:2 * H].set(forget_bias)
    bias = (b_ih + b_hh)[None, :]                                      # (1, 4H)

    # SoftGBM: tree_depth=1 -> one root Linear(H, 1) + 2 leaf phis per tree
    sd = 1.0 / jnp.sqrt(H)
    wg = jax.random.uniform(ks[4], (H, n_trees), jnp.float32, -sd, sd)   # packed
    bg = jax.random.uniform(ks[5], (1, n_trees), jnp.float32, -sd, sd)
    phil = jax.random.normal(ks[6], (1, n_trees), jnp.float32)           # left leaves
    phir = jax.random.normal(ks[7], (1, n_trees), jnp.float32)           # right leaves
    shrinkage = 0.1
    return (w_ih.T, w_hh.T, bias, wg, bg, phil, phir, shrinkage)


def reference_forward(x, params):
    """Pure-JAX reference for validation."""
    (wih_t, whh_t, bias, wg, bg, phil, phir, shrinkage) = params
    B, T, I = x.shape
    H = whh_t.shape[0]
    h = jnp.zeros((B, H), jnp.float32)
    c = jnp.zeros((B, H), jnp.float32)

    def step(carry, x_t):
        h, c = carry
        g = x_t @ wih_t + h @ whh_t + bias
        i_g = jax.nn.sigmoid(g[:, :H])
        f_g = jax.nn.sigmoid(g[:, H:2 * H])
        g_g = jnp.tanh(g[:, 2 * H:3 * H])
        o_g = jax.nn.sigmoid(g[:, 3 * H:])
        c = f_g * c + i_g * g_g
        h = o_g * jnp.tanh(c)
        return (h, c), None

    (h, c), _ = lax.scan(step, (h, c), jnp.transpose(x, (1, 0, 2)))
    p = jax.nn.sigmoid(h @ wg + bg)
    tree_pred = (1.0 - p) * phil + p * phir
    out = shrinkage * jnp.sum(tree_pred, axis=-1, keepdims=True)
    return out, (h[None], c[None])


if __name__ == "__main__":
    B, T, I, H = 2, 8, 1, 32
    n_trees = 2

    key = jax.random.PRNGKey(0)
    kx, kp = jax.random.split(key)
    x = jax.random.normal(kx, (B, T, I), jnp.float32)
    params = init_params(kp, I, H, n_trees)

    out, (h_T, c_T) = lstsgbm_forward(x, params)
    jax.block_until_ready((out, h_T, c_T))

    ref_out, (ref_h, ref_c) = reference_forward(x, params)
    assert out.shape == (B, 1) and h_T.shape == (1, B, H) and c_T.shape == (1, B, H)
    assert jnp.allclose(out, ref_out, atol=1e-5), "output mismatch"
    assert jnp.allclose(h_T, ref_h, atol=1e-5), "h_T mismatch"
    assert jnp.allclose(c_T, ref_c, atol=1e-5), "c_T mismatch"

    print("KERNEL_OK")
</pallas_src>

<mosaic_0001>
module attributes {stable_mosaic.version = 11 : i64} {
  func.func @_input_proj_kernel(%arg0: i32, %arg1: memref<64x1xf32, #tpu.memory_space<vmem>>, %arg2: memref<1x512xf32, #tpu.memory_space<vmem>>, %arg3: memref<1x512xf32, #tpu.memory_space<vmem>>, %arg4: memref<64x512xf32, #tpu.memory_space<vmem>>) attributes {dimension_semantics = [#tpu.dimension_semantics<arbitrary>], iteration_bounds = array<i64: 1>, scalar_prefetch = 0 : i64, scratch_operands = 0 : i64, tpu.core_type = #tpu.core_type<tc>, window_params = [{pipeline_mode = #tpu.pipeline_mode<synchronous>, transform_indices = @transform_0, window_bounds = array<i64: 64, 1>}, {pipeline_mode = #tpu.pipeline_mode<synchronous>, transform_indices = @transform_1, window_bounds = array<i64: 1, 512>}, {pipeline_mode = #tpu.pipeline_mode<synchronous>, transform_indices = @transform_2, window_bounds = array<i64: 1, 512>}, {pipeline_mode = #tpu.pipeline_mode<synchronous>, transform_indices = @transform_3, window_bounds = array<i64: 64, 512>}]} {
    %c0 = arith.constant 0 : index
    %c0_0 = arith.constant 0 : index
    %0 = vector.load %arg1[%c0, %c0_0] : memref<64x1xf32, #tpu.memory_space<vmem>>, vector<64x1xf32>
    %c0_1 = arith.constant 0 : index
    %c0_2 = arith.constant 0 : index
    %1 = vector.load %arg2[%c0_1, %c0_2] : memref<1x512xf32, #tpu.memory_space<vmem>>, vector<1x512xf32>
    %cst = arith.constant dense<0.000000e+00> : vector<64x512xf32>
    %2 = tpu.matmul %0, %1, %cst {dimension_numbers = #tpu.dot_dimension_numbers<[1], [0], [0], [1], [0, 0, 1, 1], [], []>} : vector<64x1xf32>, vector<1x512xf32>, vector<64x512xf32> -> vector<64x512xf32>
    %c0_3 = arith.constant 0 : index
    %c0_4 = arith.constant 0 : index
    %3 = vector.load %arg3[%c0_3, %c0_4] : memref<1x512xf32, #tpu.memory_space<vmem>>, vector<1x512xf32>
    %4 = vector.broadcast %3 : vector<1x512xf32> to vector<64x512xf32>
    %5 = arith.addf %2, %4 : vector<64x512xf32>
    %c0_5 = arith.constant 0 : index
    %c0_6 = arith.constant 0 : index
    %6 = vector.load %arg4[%c0_5, %c0_6] : memref<64x512xf32, #tpu.memory_space<vmem>>, vector<64x512xf32>
    tpu.vector_store %arg4[%c0_5, %c0_6], %5 {strides = array<i32>} : memref<64x512xf32, #tpu.memory_space<vmem>>, vector<64x512xf32>,
    return
  }
  func.func @transform_0(%arg0: i32) -> (i32, i32) {
    %c0_i32 = arith.constant 0 : i32
    %c0_i32_0 = arith.constant 0 : i32
    %c0_i32_1 = arith.constant 0 : i32
    return %c0_i32, %c0_i32_0 : i32, i32
  }
  func.func @transform_1(%arg0: i32) -> (i32, i32) {
    %c0_i32 = arith.constant 0 : i32
    %c0_i32_0 = arith.constant 0 : i32
    %c0_i32_1 = arith.constant 0 : i32
    return %c0_i32, %c0_i32_0 : i32, i32
  }
  func.func @transform_2(%arg0: i32) -> (i32, i32) {
    %c0_i32 = arith.constant 0 : i32
    %c0_i32_0 = arith.constant 0 : i32
    %c0_i32_1 = arith.constant 0 : i32
    return %c0_i32, %c0_i32_0 : i32, i32
  }
  func.func @transform_3(%arg0: i32) -> (i32, i32) {
    %c0_i32 = arith.constant 0 : i32
    %c0_i32_0 = arith.constant 0 : i32
    %c0_i32_1 = arith.constant 0 : i32
    return %c0_i32, %c0_i32_0 : i32, i32
  }
}

</mosaic_0001>

<bundles_post_ra>
// kernel: tpu_custom_call.1
= control target key start
LH: loop header
LB: loop body
LE: loop exit
PB: predicated region body
PF: predicated region fallthrough
CT: control target
= control target key end

     0   :  { %v26_v0 = vlaneseq  ;;  %v417_v1 = vmov 0.0   ;;  %s530_s0 = inlined_call_operand.vmem [shape: f32[64,1], index: 0, kind: input, shape index: {}]   ;;  %s531_s1 = inlined_call_operand.vmem [shape: f32[1,512], index: 1, kind: input, shape index: {}]   ;;  %s532_s2 = inlined_call_operand.vmem [shape: f32[1,512], index: 2, kind: input, shape index: {}]   ;;  %s533_s3 = inlined_call_operand.hbm [shape: f32[64,512], index: 3, kind: output, shape index: {}]  }
   0x1   :  { %161 = vmatprep.mubr.f32.mxu0 %v417_v1  ;;  %274 = vmatprep.mubr.f32.mxu1 %v417_v1  ;;  %v23_v3 = vld [vmem:[%s531_s1] sm:$0xf] }
   0x2   :  { %v27_v2 = vshrl.u32 %v26_v0, 7 }
   0x3   :  { %8 = vsyncpa [#allocation3], 0  ;;  %vm88_vm0 = vcmask 1040384   ;;  %v15_v12 = vld [vmem:[%s530_s0] sm:$0xff]  ;;  %vm63_vm1 = vcmask 7168   ;;  %v16_v13 = vld [vmem:[%s530_s0 + $0x8] sm:$0xff] }
   0x4   :  { %v32_v4 = vsub.s32 1, %v27_v2  ;;  %v40_v5 = vsub.s32 3, %v27_v2  ;;  %v28_v6 = vsub.s32 0, %v27_v2  ;;  %v36_v7 = vsub.s32 2, %v27_v2  ;;  %v17_v14 = vld [vmem:[%s530_s0 + $0x10] sm:$0xff]  ;;  %v18_v15 = vld [vmem:[%s530_s0 + $0x18] sm:$0xff] }
   0x5   :  { %v19_v16 = vld [vmem:[%s530_s0 + $0x20] sm:$0xff]  ;;  %v20_v17 = vld [vmem:[%s530_s0 + $0x28] sm:$0xff]  ;;  %v21_v18 = vld [vmem:[%s530_s0 + $0x30] sm:$0xff] }
   0x6   :  { %v54_v8 = vrot.slane %v23_v3, %v32_v4  ;;  %v62_v9 = vrot.slane %v23_v3, %v40_v5  ;;  %v50_v10 = vrot.slane %v23_v3, %v28_v6  ;;  %v58_v11 = vrot.slane %v23_v3, %v36_v7  ;;  %v22_v19 = vld [vmem:[%s530_s0 + $0x38] sm:$0xff]  ;;  %v24_v20 = vld [vmem:[%s532_s2] sm:$0xf]  ;;  %s418_s0 = smov [#allocation2]  }
   0x7   :  { %v487_v21 = vrot.slane %v24_v20, %v28_v6  ;;  %v489_v22 = vrot.slane %v24_v20, %v36_v7  ;;  %v491_v23 = vrot.slane %v24_v20, %v32_v4  ;;  %v493_v24 = vrot.slane %v24_v20, %v40_v5  ;;  %s360_s2 = sshll.u32 %s418_s0, 4  ;;  %s361_s2 = int_to_ptr.vmem [resolvable:$true] %s360_s2 }
   0x8   :  { %371 = vmatprep.subr.msk.mxu0 %vm88_vm0, %v54_v8  ;;  %381 = vmatprep.subr.msk.mxu1 %vm88_vm0, %v62_v9  ;;  %s395_s4 = scalar_lea.vmem %s361_s2, 4096  ;;  %p400_p1 = scmp.lt.s32.totalorder %s361_s2, %s361_s2 }
   0x9   :  { %372 = vmatpush1.msk.msra.mxu0 %vm88_vm0, %v50_v10  ;;  %382 = vmatpush1.msk.msra.mxu1 %vm88_vm0, %v58_v11  ;;  %p396_p0 = scmp.ne.s32.totalorder %s361_s2, %s395_s4  ;;  %p401_p2 = scmp.lt.s32.totalorder %s395_s4, %s395_s4 }
   0xa   :  { %373 = vmatmul.mubr.msk.f32.vlgmr.msra.gmra.mxu0 %vm63_vm1, %v15_v12  ;;  %383 = vmatmul.mubr.msk.f32.vlgmr.msra.gmra.mxu1 %vm63_vm1, %v15_v12 }
   0xb   :  { %167 = vmatprep.mubr.f32.mxu0 %v417_v1  ;;  %280 = vmatprep.mubr.f32.mxu1 %v417_v1  ;;  %p402_p3 = por %p401_p2, %p400_p1 }
   0xd   :  { %p403_p4 = pnand %p402_p3, %p396_p0 }
   0xe   :  { %374 = vmatmul.mubr.msk.f32.gmra.mxu0 %vm63_vm1, %v16_v13  ;;  %384 = vmatmul.mubr.msk.f32.gmra.mxu1 %vm63_vm1, %v16_v13 }
   0xf   :  { %173 = vmatprep.mubr.f32.mxu0 %v417_v1  ;;  %286 = vmatprep.mubr.f32.mxu1 %v417_v1 }
  0x12   :  { %375 = vmatmul.mubr.msk.f32.gmra.mxu0 %vm63_vm1, %v17_v14  ;;  %385 = vmatmul.mubr.msk.f32.gmra.mxu1 %vm63_vm1, %v17_v14 }
  0x13   :  { %179 = vmatprep.mubr.f32.mxu0 %v417_v1  ;;  %292 = vmatprep.mubr.f32.mxu1 %v417_v1 }
  0x16   :  { %376 = vmatmul.mubr.msk.f32.gmra.mxu0 %vm63_vm1, %v18_v15  ;;  %386 = vmatmul.mubr.msk.f32.gmra.mxu1 %vm63_vm1, %v18_v15 }
  0x17   :  { %185 = vmatprep.mubr.f32.mxu0 %v417_v1  ;;  %298 = vmatprep.mubr.f32.mxu1 %v417_v1 }
  0x1a   :  { %377 = vmatmul.mubr.msk.f32.gmra.mxu0 %vm63_vm1, %v19_v16  ;;  %387 = vmatmul.mubr.msk.f32.gmra.mxu1 %vm63_vm1, %v19_v16 }
  0x1b   :  { %191 = vmatprep.mubr.f32.mxu0 %v417_v1  ;;  %304 = vmatprep.mubr.f32.mxu1 %v417_v1 }
  0x1e   :  { %378 = vmatmul.mubr.msk.f32.gmra.mxu0 %vm63_vm1, %v20_v17  ;;  %388 = vmatmul.mubr.msk.f32.gmra.mxu1 %vm63_vm1, %v20_v17 }
  0x1f   :  { %197 = vmatprep.mubr.f32.mxu0 %v417_v1  ;;  %310 = vmatprep.mubr.f32.mxu1 %v417_v1 }
  0x22   :  { %379 = vmatmul.mubr.msk.f32.gmra.mxu0 %vm63_vm1, %v21_v18  ;;  %389 = vmatmul.mubr.msk.f32.gmra.mxu1 %vm63_vm1, %v21_v18 }
  0x23   :  { %203 = vmatprep.mubr.f32.mxu0 %v417_v1  ;;  %316 = vmatprep.mubr.f32.mxu1 %v417_v1 }
  0x26   :  { %380 = vmatmul.mubr.msk.f32.gmra.mxu0 %vm63_vm1, %v22_v19  ;;  %390 = vmatmul.mubr.msk.f32.gmra.mxu1 %vm63_vm1, %v22_v19 }
  0xca   :  { %v163_v25 = vpop.f32.mrf.mxu0  ;;  %v276_v26 = vpop.f32.mrf.mxu1 }
  0xcb   :  { %v164_v27 = vadd.f32 %v163_v25, %v487_v21  ;;  %v277_v28 = vadd.f32 %v276_v26, %v489_v22 }
  0xcc   :  { %v165_v29 = vpop.f32.mrf.mxu0  ;;  %v278_v30 = vpop.f32.mrf.mxu1 }
  0xcd   :  { %323 = vst [vmem:[#allocation2] sm:$0xff] %v164_v27  ;;  %325 = vst [vmem:[#allocation2 + $0x10] sm:$0xff] %v277_v28  ;;  %v166_v31 = vadd.f32 %v165_v29, %v491_v23  ;;  %v279_v32 = vadd.f32 %v278_v30, %v493_v24 }
  0xce   :  { %v169_v33 = vpop.f32.mrf.mxu0  ;;  %v282_v34 = vpop.f32.mrf.mxu1 }
  0xcf   :  { %324 = vst [vmem:[#allocation2 + $0x8] sm:$0xff] %v166_v31  ;;  %326 = vst [vmem:[#allocation2 + $0x18] sm:$0xff] %v279_v32  ;;  %v170_v35 = vadd.f32 %v169_v33, %v487_v21  ;;  %v283_v36 = vadd.f32 %v282_v34, %v489_v22 }
  0xd0   :  { %v171_v37 = vpop.f32.mrf.mxu0  ;;  %v284_v38 = vpop.f32.mrf.mxu1 }
  0xd1   :  { %327 = vst [vmem:[#allocation2 + $0x20] sm:$0xff] %v170_v35  ;;  %329 = vst [vmem:[#allocation2 + $0x30] sm:$0xff] %v283_v36  ;;  %v172_v39 = vadd.f32 %v171_v37, %v491_v23  ;;  %v285_v40 = vadd.f32 %v284_v38, %v493_v24 }
  0xd2   :  { %v175_v41 = vpop.f32.mrf.mxu0  ;;  %v288_v42 = vpop.f32.mrf.mxu1 }
  0xd3   :  { %328 = vst [vmem:[#allocation2 + $0x28] sm:$0xff] %v172_v39  ;;  %330 = vst [vmem:[#allocation2 + $0x38] sm:$0xff] %v285_v40  ;;  %v176_v43 = vadd.f32 %v175_v41, %v487_v21  ;;  %v289_v44 = vadd.f32 %v288_v42, %v489_v22 }
  0xd4   :  { %v177_v45 = vpop.f32.mrf.mxu0  ;;  %v290_v46 = vpop.f32.mrf.mxu1 }
  0xd5   :  { %331 = vst [vmem:[#allocation2 + $0x40] sm:$0xff] %v176_v43  ;;  %333 = vst [vmem:[#allocation2 + $0x50] sm:$0xff] %v289_v44  ;;  %v178_v47 = vadd.f32 %v177_v45, %v491_v23  ;;  %v291_v48 = vadd.f32 %v290_v46, %v493_v24 }
  0xd6   :  { %v181_v49 = vpop.f32.mrf.mxu0  ;;  %v294_v50 = vpop.f32.mrf.mxu1 }
  0xd7   :  { %332 = vst [vmem:[#allocation2 + $0x48] sm:$0xff] %v178_v47  ;;  %334 = vst [vmem:[#allocation2 + $0x58] sm:$0xff] %v291_v48  ;;  %v182_v51 = vadd.f32 %v181_v49, %v487_v21  ;;  %v295_v52 = vadd.f32 %v294_v50, %v489_v22 }
  0xd8   :  { %v183_v53 = vpop.f32.mrf.mxu0  ;;  %v296_v54 = vpop.f32.mrf.mxu1 }
  0xd9   :  { %335 = vst [vmem:[#allocation2 + $0x60] sm:$0xff] %v182_v51  ;;  %337 = vst [vmem:[#allocation2 + $0x70] sm:$0xff] %v295_v52  ;;  %v184_v55 = vadd.f32 %v183_v53, %v491_v23  ;;  %v297_v56 = vadd.f32 %v296_v54, %v493_v24 }
  0xda   :  { %v187_v57 = vpop.f32.mrf.mxu0  ;;  %v300_v58 = vpop.f32.mrf.mxu1 }
  0xdb   :  { %336 = vst [vmem:[#allocation2 + $0x68] sm:$0xff] %v184_v55  ;;  %338 = vst [vmem:[#allocation2 + $0x78] sm:$0xff] %v297_v56  ;;  %v188_v59 = vadd.f32 %v187_v57, %v487_v21  ;;  %v301_v60 = vadd.f32 %v300_v58, %v489_v22 }
  0xdc   :  { %v189_v61 = vpop.f32.mrf.mxu0  ;;  %v302_v62 = vpop.f32.mrf.mxu1 }
  0xdd   :  { %339 = vst [vmem:[#allocation2 + $0x80] sm:$0xff] %v188_v59  ;;  %341 = vst [vmem:[#allocation2 + $0x90] sm:$0xff] %v301_v60  ;;  %v190_v63 = vadd.f32 %v189_v61, %v491_v23  ;;  %v303_v0 = vadd.f32 %v302_v62, %v493_v24 }
  0xde   :  { %v193_v1 = vpop.f32.mrf.mxu0  ;;  %v306_v2 = vpop.f32.mrf.mxu1 }
  0xdf   :  { %340 = vst [vmem:[#allocation2 + $0x88] sm:$0xff] %v190_v63  ;;  %342 = vst [vmem:[#allocation2 + $0x98] sm:$0xff] %v303_v0  ;;  %v194_v3 = vadd.f32 %v193_v1, %v487_v21  ;;  %v307_v4 = vadd.f32 %v306_v2, %v489_v22 }
  0xe0   :  { %v195_v5 = vpop.f32.mrf.mxu0  ;;  %v308_v6 = vpop.f32.mrf.mxu1 }
  0xe1   :  { %343 = vst [vmem:[#allocation2 + $0xa0] sm:$0xff] %v194_v3  ;;  %345 = vst [vmem:[#allocation2 + $0xb0] sm:$0xff] %v307_v4  ;;  %v196_v7 = vadd.f32 %v195_v5, %v491_v23  ;;  %v309_v8 = vadd.f32 %v308_v6, %v493_v24 }
  0xe2   :  { %v199_v9 = vpop.f32.mrf.mxu0  ;;  %v312_v10 = vpop.f32.mrf.mxu1 }
  0xe3   :  { %344 = vst [vmem:[#allocation2 + $0xa8] sm:$0xff] %v196_v7  ;;  %346 = vst [vmem:[#allocation2 + $0xb8] sm:$0xff] %v309_v8  ;;  %v200_v11 = vadd.f32 %v199_v9, %v487_v21  ;;  %v313_v12 = vadd.f32 %v312_v10, %v489_v22 }
  0xe4   :  { %v201_v13 = vpop.f32.mrf.mxu0  ;;  %v314_v14 = vpop.f32.mrf.mxu1 }
  0xe5   :  { %347 = vst [vmem:[#allocation2 + $0xc0] sm:$0xff] %v200_v11  ;;  %349 = vst [vmem:[#allocation2 + $0xd0] sm:$0xff] %v313_v12  ;;  %v202_v15 = vadd.f32 %v201_v13, %v491_v23  ;;  %v315_v16 = vadd.f32 %v314_v14, %v493_v24 }
  0xe6   :  { %v205_v17 = vpop.f32.mrf.mxu0  ;;  %v318_v18 = vpop.f32.mrf.mxu1 }
  0xe7   :  { %348 = vst [vmem:[#allocation2 + $0xc8] sm:$0xff] %v202_v15  ;;  %350 = vst [vmem:[#allocation2 + $0xd8] sm:$0xff] %v315_v16  ;;  %v206_v19 = vadd.f32 %v205_v17, %v487_v21  ;;  %v319_v20 = vadd.f32 %v318_v18, %v489_v22 }
  0xe8   :  { %v207_v25 = vpop.f32.mrf.mxu0  ;;  %v320_v26 = vpop.f32.mrf.mxu1 }
  0xe9   :  { %351 = vst [vmem:[#allocation2 + $0xe0] sm:$0xff] %v206_v19  ;;  %353 = vst [vmem:[#allocation2 + $0xf0] sm:$0xff] %v319_v20  ;;  %v208_v27 = vadd.f32 %v207_v25, %v491_v23  ;;  %v321_v28 = vadd.f32 %v320_v26, %v493_v24 }
  0xeb   :  { %352 = vst [vmem:[#allocation2 + $0xe8] sm:$0xff] %v208_v27  ;;  %354 = vst [vmem:[#allocation2 + $0xf8] sm:$0xff] %v321_v28 }
  0xec   :  { %406 = shalt.err (!%p403_p4)
}
  0xed   :  { %s419_s5 = smov 512   ;;  %s420_s6 = smov 32  }
  0xee   :  { %366 = dma.vmem_to_hbm [thread:$0]  %s361_s2, 4096, %s533_s3, [#allocation3], %s419_s5, %s419_s5, %s420_s6  }
  0xef   :  { %415 = dma.done.wait [#allocation3], 4096  }
  0xf0   :  { %416 = vsyncadd [#allocation3], 4294963200 }
  0xf1   :  { %370 = vsyncpa [#allocation3], 1 }

</bundles_post_ra>
